<compile_context>
chip_gen: v7x
topology: tpu7x:2x2x1
jax: 0.10.0
libtpu: 0.0.40
codegen_flags: <defaults>
</compile_context>

<pallas_src>
import jax
import jax.numpy as jnp
from jax.experimental import pallas as pl
from jax.experimental.pallas import tpu as pltpu

# Small, self-consistent hyperparameters (module __init__ signature).
LOC_EMB = 16      # loc_embedding_dim
TIME_EMB = 8      # time_embedding_dim
HIDDEN = 32       # hidden_dim
POINT_SIZE = 64   # point_size
LN_EPS = 1e-6
IN_EMB = LOC_EMB + TIME_EMB   # GRU input size
OUT_LANES = 128               # lane-dense output slab width

# ---- packed weight slab layout (rows; every section start is 8-aligned) ----
R_EMB_LOC = 0                       # 64 rows, lanes [0:16]
R_EMB_TIME = 64                     # 24 rows, lanes [0:8]
R_ODE_W = 88                        # 40 rows (32 hidden + 8 dur), lanes [0:32]
R_WIH = 128                         # 24 rows (16 loc + 8 tim), lanes [0:96]
R_WHH = 152                         # 32 rows, lanes [0:96]
R_OUT_W = 184                       # 32 rows, lanes [0:64]
R_ODE_B = 216                       # 1 row, lanes [0:32]
R_BIH = 217                         # 1 row, lanes [0:96]
R_BHH = 218                         # 1 row, lanes [0:96]
R_OUT_B = 219                       # 1 row, lanes [0:64]
N_ROWS = 224                        # padded to a multiple of 8


def _gen_loc_seq_kernel(ids_ref, h0_ref, w_ref, out_ref, hid_ref):
    """One GRU/ODE/LayerNorm/log_softmax timestep per grid invocation.

    ids_ref : SMEM int32[3*T]   (scalar prefetch)
    h0_ref  : VMEM f32[1, H]    initial hidden (loaded once)
    w_ref   : VMEM f32[224,128] packed weight slab (loaded once)
    out_ref : VMEM f32[1, 128]  per-step output row
    hid_ref : VMEM f32[1, H]    recurrent hidden carried across grid steps
    """
    H = HIDDEN
    t = pl.program_id(0)

    @pl.when(t == 0)
    def _():
        hid_ref[...] = h0_ref[...]

    h_prev = hid_ref[...]                                      # (1, H)

    # Token ids for this step (SMEM scalars).
    loc_id = ids_ref[3 * t + 0]
    tim_id = ids_ref[3 * t + 1]
    dur_id = ids_ref[3 * t + 2]

    # Embedding gathers: dynamic-row (full-lane) loads, lane sub-slice in-reg.
    loc = w_ref[pl.ds(R_EMB_LOC + loc_id, 1), :][:, :LOC_EMB]   # (1, 16)
    tim = w_ref[pl.ds(R_EMB_TIME + tim_id, 1), :][:, :TIME_EMB]  # (1, 8)
    dur = w_ref[pl.ds(R_EMB_TIME + dur_id, 1), :][:, :TIME_EMB]  # (1, 8)

    # Static slices of the packed slab.
    ode_wh = w_ref[R_ODE_W:R_ODE_W + H, :H]                      # (32, 32)
    ode_wt = w_ref[R_ODE_W + H:R_ODE_W + H + TIME_EMB, :H]       # (8, 32)
    ode_b = w_ref[R_ODE_B:R_ODE_B + 1, :H]                       # (1, 32)
    wih_l = w_ref[R_WIH:R_WIH + LOC_EMB, :3 * H]                 # (16, 96)
    wih_t = w_ref[R_WIH + LOC_EMB:R_WIH + IN_EMB, :3 * H]        # (8, 96)
    bih = w_ref[R_BIH:R_BIH + 1, :3 * H]                         # (1, 96)
    whh = w_ref[R_WHH:R_WHH + H, :3 * H]                         # (32, 96)
    bhh = w_ref[R_BHH:R_BHH + 1, :3 * H]                         # (1, 96)
    out_w = w_ref[R_OUT_W:R_OUT_W + H, :POINT_SIZE]              # (32, 64)
    out_b = w_ref[R_OUT_B:R_OUT_B + 1, :POINT_SIZE]              # (1, 64)

    # ODE (two Linears pre-folded into one affine map) + ReLU.
    # cat(hidden, dur) @ W == hidden @ W[:H] + dur @ W[H:].
    h_ode = (jnp.dot(h_prev, ode_wh, preferred_element_type=jnp.float32)
             + jnp.dot(dur, ode_wt, preferred_element_type=jnp.float32)
             + ode_b)
    h_ode = jnp.maximum(h_ode, 0.0)                              # (1, H)

    # GRU cell (PyTorch gate order r, z, n), 2 fused (., 3H) matmuls;
    # cat(loc, tim) handled by the row-split input weights.
    gi = (jnp.dot(loc, wih_l, preferred_element_type=jnp.float32)
          + jnp.dot(tim, wih_t, preferred_element_type=jnp.float32)
          + bih)                                                 # (1, 3H)
    gh = jnp.dot(h_ode, whh, preferred_element_type=jnp.float32) + bhh

    rz = jax.nn.sigmoid(gi[:, :2 * H] + gh[:, :2 * H])           # [r | z]
    r = rz[:, :H]
    z = rz[:, H:]
    n = jnp.tanh(gi[:, 2 * H:] + r * gh[:, 2 * H:])
    h_new = (1.0 - z) * n + z * h_ode                            # (1, H)

    hid_ref[...] = h_new        # carry to the next grid step

    # LayerNorm stats only (gamma/beta folded into out_w / out_b).
    mu = jnp.mean(h_new, axis=-1, keepdims=True)
    var = jnp.mean((h_new - mu) ** 2, axis=-1, keepdims=True)
    y = (h_new - mu) * jax.lax.rsqrt(var + LN_EPS)

    # gru2loc + max-stabilized log_softmax(dim=1).
    logits = jnp.dot(y, out_w, preferred_element_type=jnp.float32) + out_b
    m = jnp.max(logits, axis=-1, keepdims=True)
    s = logits - m
    logp = s - jnp.log(jnp.sum(jnp.exp(s), axis=-1, keepdims=True))

    # Lane-packed output row: [ logp (64) | h_new (32) | zeros (32) ].
    out_ref[:, :POINT_SIZE] = logp
    out_ref[:, POINT_SIZE:POINT_SIZE + HIDDEN] = h_new
    out_ref[:, POINT_SIZE + HIDDEN:] = jnp.zeros(
        (1, OUT_LANES - POINT_SIZE - HIDDEN), jnp.float32)


def init_params(key):
    """Raw parameters in PyTorch-equivalent layout (weights as (in, out))."""
    ks = jax.random.split(key, 12)

    def rnd(k, shape, scale=0.1):
        return (scale * jax.random.normal(k, shape)).astype(jnp.float32)

    return {
        "emb_loc": rnd(ks[0], (POINT_SIZE, LOC_EMB)),
        "emb_time": rnd(ks[1], (24, TIME_EMB)),
        # ODE: Linear(hidden+time_emb, 10), Linear(10, hidden)
        "ode_w1": rnd(ks[2], (HIDDEN + TIME_EMB, 10)),
        "ode_b1": rnd(ks[3], (1, 10)),
        "ode_w2": rnd(ks[4], (10, HIDDEN)),
        "ode_b2": rnd(ks[5], (1, HIDDEN)),
        # GRU weights stacked per gate (r, z, n)
        "wih": rnd(ks[6], (3, IN_EMB, HIDDEN)),
        "whh": rnd(ks[7], (3, HIDDEN, HIDDEN)),
        "bih": rnd(ks[8], (3, 1, HIDDEN)),
        "bhh": rnd(ks[9], (3, 1, HIDDEN)),
        # LayerNorm
        "ln_g": jnp.ones((1, HIDDEN), jnp.float32),
        "ln_b": jnp.zeros((1, HIDDEN), jnp.float32),
        # gru2loc
        "out_w": rnd(ks[10], (HIDDEN, POINT_SIZE)),
        "out_b": rnd(ks[11], (1, POINT_SIZE)),
    }


def fold_params(p):
    """Exact offline algebraic folding + packing into one (224,128) f32 slab."""
    H = HIDDEN
    # ODE: two Linears with no nonlinearity in between -> single affine map.
    ode_w = p["ode_w1"] @ p["ode_w2"]                               # (H+T, H)
    ode_b = p["ode_b1"] @ p["ode_w2"] + p["ode_b2"]                 # (1, H)
    # GRU gates stacked along lanes: (in, 3H), gate order (r, z, n).
    wih = jnp.concatenate([p["wih"][g] for g in range(3)], axis=1)  # (IN, 3H)
    whh = jnp.concatenate([p["whh"][g] for g in range(3)], axis=1)  # (H, 3H)
    bih = jnp.concatenate([p["bih"][g] for g in range(3)], axis=1)  # (1, 3H)
    bhh = jnp.concatenate([p["bhh"][g] for g in range(3)], axis=1)  # (1, 3H)
    # LayerNorm affine folded into gru2loc: row-scale W, shift bias.
    out_w = p["ln_g"].reshape(-1, 1) * p["out_w"]                   # (H, P)
    out_b = p["out_b"] + p["ln_b"] @ p["out_w"]                     # (1, P)

    slab = jnp.zeros((N_ROWS, OUT_LANES), jnp.float32)
    slab = slab.at[R_EMB_LOC:R_EMB_LOC + POINT_SIZE, :LOC_EMB].set(p["emb_loc"])
    slab = slab.at[R_EMB_TIME:R_EMB_TIME + 24, :TIME_EMB].set(p["emb_time"])
    slab = slab.at[R_ODE_W:R_ODE_W + H + TIME_EMB, :H].set(ode_w)
    slab = slab.at[R_WIH:R_WIH + IN_EMB, :3 * H].set(wih)
    slab = slab.at[R_WHH:R_WHH + H, :3 * H].set(whh)
    slab = slab.at[R_OUT_W:R_OUT_W + H, :POINT_SIZE].set(out_w)
    slab = slab.at[R_ODE_B, :H].set(ode_b[0])
    slab = slab.at[R_BIH, :3 * H].set(bih[0])
    slab = slab.at[R_BHH, :3 * H].set(bhh[0])
    slab = slab.at[R_OUT_B, :POINT_SIZE].set(out_b[0])
    return slab


def _run_seq(weight_slab, ids_flat, h0):
    """One pallas_call over T timesteps; weights DMA'd once, ids in SMEM."""
    T = ids_flat.shape[0] // 3
    grid_spec = pltpu.PrefetchScalarGridSpec(
        num_scalar_prefetch=1,
        grid=(T,),
        in_specs=[
            pl.BlockSpec((1, HIDDEN), lambda t, ids: (0, 0)),           # h0
            pl.BlockSpec((N_ROWS, OUT_LANES), lambda t, ids: (0, 0)),   # slab
        ],
        out_specs=pl.BlockSpec((1, OUT_LANES), lambda t, ids: (t, 0)),
        scratch_shapes=[pltpu.VMEM((1, HIDDEN), jnp.float32)],
    )
    return pl.pallas_call(
        _gen_loc_seq_kernel,
        out_shape=jax.ShapeDtypeStruct((T, OUT_LANES), jnp.float32),
        grid_spec=grid_spec,
        compiler_params=pltpu.CompilerParams(
            dimension_semantics=("arbitrary",)),   # true recurrence over T
    )(ids_flat, h0, weight_slab)


def gen_loc_forward_seq(weight_slab, xs, hidden):
    """xs: int32[T, 3] = [loc_id, arrival_hour, duration_bucket] per step.
    hidden: f32[1, 1, H] initial state.
    Returns (log_probs f32[T, point_size], final hidden f32[1, 1, H])."""
    T = xs.shape[0]
    # Clamp ids host-side: VMEM gathers have no runtime bounds check.
    lo = jnp.zeros((3,), jnp.int32)
    hi = jnp.array([POINT_SIZE - 1, 23, 23], jnp.int32)
    ids = jnp.clip(xs.astype(jnp.int32), lo, hi).reshape(-1)
    slab = _run_seq(weight_slab, ids, hidden.reshape(1, HIDDEN))
    logp = slab[:, :POINT_SIZE]
    h_new = slab[T - 1, POINT_SIZE:POINT_SIZE + HIDDEN].reshape(1, 1, HIDDEN)
    return logp, h_new


def gen_loc_forward(weight_slab, x, hidden):
    """Original single-token module forward: x int32[3], hidden f32[1,1,H]."""
    return gen_loc_forward_seq(weight_slab, x.reshape(1, 3), hidden)


def gen_loc_reference(params, x, hidden):
    """Pure-JAX reference on the RAW (unfolded) params, for correctness checks."""
    loc = params["emb_loc"][x[0]]
    tim = params["emb_time"][x[1]]
    dur = params["emb_time"][x[2]]
    point = jnp.concatenate([loc, tim])[None, :]
    hcat = jnp.concatenate([hidden.reshape(-1), dur])[None, :]

    z1 = hcat @ params["ode_w1"] + params["ode_b1"]
    h_ode = jnp.maximum(z1 @ params["ode_w2"] + params["ode_b2"], 0.0)

    gi = [point @ params["wih"][g] + params["bih"][g] for g in range(3)]
    gh = [h_ode @ params["whh"][g] + params["bhh"][g] for g in range(3)]
    r = jax.nn.sigmoid(gi[0] + gh[0])
    z = jax.nn.sigmoid(gi[1] + gh[1])
    n = jnp.tanh(gi[2] + r * gh[2])
    h_new = (1.0 - z) * n + z * h_ode

    mu = jnp.mean(h_new, axis=-1, keepdims=True)
    var = jnp.mean((h_new - mu) ** 2, axis=-1, keepdims=True)
    y = (h_new - mu) / jnp.sqrt(var + LN_EPS) * params["ln_g"] + params["ln_b"]

    logits = y @ params["out_w"] + params["out_b"]
    logp = jax.nn.log_softmax(logits, axis=1)
    return logp, h_new.reshape(1, 1, HIDDEN)


if __name__ == "__main__":
    key = jax.random.PRNGKey(0)
    params = init_params(key)
    w_slab = fold_params(params)

    hidden0 = jnp.zeros((1, 1, HIDDEN), jnp.float32)   # init_hidden()

    # ---- single-token forward (original module semantics: T = 1) ----
    x = jnp.array([5, 13, 3], dtype=jnp.int32)
    fwd = jax.jit(gen_loc_forward)
    logp, h1 = fwd(w_slab, x, hidden0)
    jax.block_until_ready((logp, h1))

    ref_logp, ref_h1 = gen_loc_reference(params, x, hidden0)
    assert logp.shape == (1, POINT_SIZE) and h1.shape == (1, 1, HIDDEN)
    assert jnp.allclose(logp, ref_logp, atol=1e-4, rtol=1e-4)
    assert jnp.allclose(h1, ref_h1, atol=1e-4, rtol=1e-4)
    assert jnp.allclose(jnp.sum(jnp.exp(logp)), 1.0, atol=1e-4)

    # ---- sequence variant: T=8 tokens, one pallas_call, weights DMA'd once ----
    T = 8
    kx, kt, kd = jax.random.split(jax.random.PRNGKey(1), 3)
    xs = jnp.stack([jax.random.randint(kx, (T,), 0, POINT_SIZE),
                    jax.random.randint(kt, (T,), 0, 24),
                    jax.random.randint(kd, (T,), 0, 24)], axis=1).astype(jnp.int32)
    fwd_seq = jax.jit(gen_loc_forward_seq)
    logp_seq, h_fin = fwd_seq(w_slab, xs, hidden0)
    jax.block_until_ready((logp_seq, h_fin))

    # Reference: python loop of the per-token reference over the sequence.
    h_ref = hidden0
    ref_rows = []
    for t in range(T):
        lp, h_ref = gen_loc_reference(params, xs[t], h_ref)
        ref_rows.append(lp)
    ref_seq = jnp.concatenate(ref_rows, axis=0)

    assert logp_seq.shape == (T, POINT_SIZE) and h_fin.shape == (1, 1, HIDDEN)
    assert jnp.allclose(logp_seq, ref_seq, atol=1e-4, rtol=1e-4)
    assert jnp.allclose(h_fin, h_ref, atol=1e-4, rtol=1e-4)
    assert jnp.allclose(jnp.sum(jnp.exp(logp_seq), axis=-1),
                        jnp.ones((T,)), atol=1e-4)

    # TODO(synk): pretrain()/get_loc() (NLL loss over batches, torch.multinomial
    # sampling) are host-side driver code and stay outside the kernel.
    print("KERNEL_OK")
</pallas_src>

<mosaic_0001>
module attributes {stable_mosaic.version = 11 : i64} {
  func.func @_gen_loc_seq_kernel(%arg0: i32, %arg1: memref<3xi32, #tpu.memory_space<smem>>, %arg2: memref<1x32xf32, #tpu.memory_space<vmem>>, %arg3: memref<224x128xf32, #tpu.memory_space<vmem>>, %arg4: memref<1x128xf32, #tpu.memory_space<vmem>>, %arg5: memref<1x32xf32, #tpu.memory_space<vmem>>) attributes {dimension_semantics = [#tpu.dimension_semantics<arbitrary>], iteration_bounds = array<i64: 1>, scalar_prefetch = 1 : i64, scratch_operands = 1 : i64, tpu.core_type = #tpu.core_type<tc>, window_params = [{pipeline_mode = #tpu.pipeline_mode<synchronous>, transform_indices = @transform_0, window_bounds = array<i64: 1, 32>}, {pipeline_mode = #tpu.pipeline_mode<synchronous>, transform_indices = @transform_1, window_bounds = array<i64: 224, 128>}, {transform_indices = @transform_2, window_bounds = array<i64: 1, 128>}]} {
    %c0_i32 = arith.constant 0 : i32
    %0 = arith.cmpi eq, %arg0, %c0_i32 : i32
    %1 = arith.extui %0 : i1 to i32
    %c0_i32_0 = arith.constant 0 : i32
    %2 = arith.cmpi ne, %1, %c0_i32_0 : i32
    scf.if %2 {
      %c0_42 = arith.constant 0 : index
      %c0_43 = arith.constant 0 : index
      %105 = vector.load %arg2[%c0_42, %c0_43] : memref<1x32xf32, #tpu.memory_space<vmem>>, vector<1x32xf32>
      %c0_44 = arith.constant 0 : index
      %c0_45 = arith.constant 0 : index
      %106 = vector.load %arg5[%c0_44, %c0_45] : memref<1x32xf32, #tpu.memory_space<vmem>>, vector<1x32xf32>
      tpu.vector_store %arg5[%c0_44, %c0_45], %105 {strides = array<i32>} : memref<1x32xf32, #tpu.memory_space<vmem>>, vector<1x32xf32>,
    } else {
    }
    %c0 = arith.constant 0 : index
    %c0_1 = arith.constant 0 : index
    %3 = vector.load %arg5[%c0, %c0_1] : memref<1x32xf32, #tpu.memory_space<vmem>>, vector<1x32xf32>
    %c3_i32 = arith.constant 3 : i32
    %4 = arith.muli %c3_i32, %arg0 : i32
    %c0_i32_2 = arith.constant 0 : i32
    %5 = arith.addi %4, %c0_i32_2 : i32
    %6 = arith.index_cast %5 : i32 to index
    %7 = memref.load %arg1[%6] : memref<3xi32, #tpu.memory_space<smem>>
    %c3_i32_3 = arith.constant 3 : i32
    %8 = arith.muli %c3_i32_3, %arg0 : i32
    %c1_i32 = arith.constant 1 : i32
    %9 = arith.addi %8, %c1_i32 : i32
    %10 = arith.index_cast %9 : i32 to index
    %11 = memref.load %arg1[%10] : memref<3xi32, #tpu.memory_space<smem>>
    %c3_i32_4 = arith.constant 3 : i32
    %12 = arith.muli %c3_i32_4, %arg0 : i32
    %c2_i32 = arith.constant 2 : i32
    %13 = arith.addi %12, %c2_i32 : i32
    %14 = arith.index_cast %13 : i32 to index
    %15 = memref.load %arg1[%14] : memref<3xi32, #tpu.memory_space<smem>>
    %c0_i32_5 = arith.constant 0 : i32
    %16 = arith.addi %c0_i32_5, %7 : i32
    %17 = arith.index_cast %16 : i32 to index
    %c0_6 = arith.constant 0 : index
    %18 = vector.load %arg3[%17, %c0_6] : memref<224x128xf32, #tpu.memory_space<vmem>>, vector<1x128xf32>
    %19 = vector.extract_strided_slice %18 {offsets = [0, 0], sizes = [1, 16], strides = [1, 1]} : vector<1x128xf32> to vector<1x16xf32>
    %c64_i32 = arith.constant 64 : i32
    %20 = arith.addi %c64_i32, %11 : i32
    %21 = arith.index_cast %20 : i32 to index
    %c0_7 = arith.constant 0 : index
    %22 = vector.load %arg3[%21, %c0_7] : memref<224x128xf32, #tpu.memory_space<vmem>>, vector<1x128xf32>
    %23 = vector.extract_strided_slice %22 {offsets = [0, 0], sizes = [1, 8], strides = [1, 1]} : vector<1x128xf32> to vector<1x8xf32>
    %c64_i32_8 = arith.constant 64 : i32
    %24 = arith.addi %c64_i32_8, %15 : i32
    %25 = arith.index_cast %24 : i32 to index
    %c0_9 = arith.constant 0 : index
    %26 = vector.load %arg3[%25, %c0_9] : memref<224x128xf32, #tpu.memory_space<vmem>>, vector<1x128xf32>
    %27 = vector.extract_strided_slice %26 {offsets = [0, 0], sizes = [1, 8], strides = [1, 1]} : vector<1x128xf32> to vector<1x8xf32>
    %c88 = arith.constant 88 : index
    %c0_10 = arith.constant 0 : index
    %28 = vector.load %arg3[%c88, %c0_10] : memref<224x128xf32, #tpu.memory_space<vmem>>, vector<32x32xf32>
    %c120 = arith.constant 120 : index
    %c0_11 = arith.constant 0 : index
    %29 = vector.load %arg3[%c120, %c0_11] : memref<224x128xf32, #tpu.memory_space<vmem>>, vector<8x32xf32>
    %c216 = arith.constant 216 : index
    %c0_12 = arith.constant 0 : index
    %30 = vector.load %arg3[%c216, %c0_12] : memref<224x128xf32, #tpu.memory_space<vmem>>, vector<1x32xf32>
    %c128 = arith.constant 128 : index
    %c0_13 = arith.constant 0 : index
    %31 = vector.load %arg3[%c128, %c0_13] : memref<224x128xf32, #tpu.memory_space<vmem>>, vector<16x96xf32>
    %c144 = arith.constant 144 : index
    %c0_14 = arith.constant 0 : index
    %32 = vector.load %arg3[%c144, %c0_14] : memref<224x128xf32, #tpu.memory_space<vmem>>, vector<8x96xf32>
    %c217 = arith.constant 217 : index
    %c0_15 = arith.constant 0 : index
    %33 = vector.load %arg3[%c217, %c0_15] : memref<224x128xf32, #tpu.memory_space<vmem>>, vector<1x96xf32>
    %c152 = arith.constant 152 : index
    %c0_16 = arith.constant 0 : index
    %34 = vector.load %arg3[%c152, %c0_16] : memref<224x128xf32, #tpu.memory_space<vmem>>, vector<32x96xf32>
    %c218 = arith.constant 218 : index
    %c0_17 = arith.constant 0 : index
    %35 = vector.load %arg3[%c218, %c0_17] : memref<224x128xf32, #tpu.memory_space<vmem>>, vector<1x96xf32>
    %c184 = arith.constant 184 : index
    %c0_18 = arith.constant 0 : index
    %36 = vector.load %arg3[%c184, %c0_18] : memref<224x128xf32, #tpu.memory_space<vmem>>, vector<32x64xf32>
    %c219 = arith.constant 219 : index
    %c0_19 = arith.constant 0 : index
    %37 = vector.load %arg3[%c219, %c0_19] : memref<224x128xf32, #tpu.memory_space<vmem>>, vector<1x64xf32>
    %cst = arith.constant dense<0.000000e+00> : vector<1x32xf32>
    %38 = tpu.matmul %3, %28, %cst {dimension_numbers = #tpu.dot_dimension_numbers<[1], [0], [0], [1], [0, 0, 1, 1], [], []>} : vector<1x32xf32>, vector<32x32xf32>, vector<1x32xf32> -> vector<1x32xf32>
    %cst_20 = arith.constant dense<0.000000e+00> : vector<1x32xf32>
    %39 = tpu.matmul %27, %29, %cst_20 {dimension_numbers = #tpu.dot_dimension_numbers<[1], [0], [0], [1], [0, 0, 1, 1], [], []>} : vector<1x8xf32>, vector<8x32xf32>, vector<1x32xf32> -> vector<1x32xf32>
    %40 = arith.addf %38, %39 : vector<1x32xf32>
    %41 = arith.addf %40, %30 : vector<1x32xf32>
    %cst_21 = arith.constant 0.000000e+00 : f32
    %42 = vector.broadcast %cst_21 : f32 to vector<1x32xf32>
    %43 = arith.maximumf %41, %42 : vector<1x32xf32>
    %cst_22 = arith.constant dense<0.000000e+00> : vector<1x96xf32>
    %44 = tpu.matmul %19, %31, %cst_22 {dimension_numbers = #tpu.dot_dimension_numbers<[1], [0], [0], [1], [0, 0, 1, 1], [], []>} : vector<1x16xf32>, vector<16x96xf32>, vector<1x96xf32> -> vector<1x96xf32>
    %cst_23 = arith.constant dense<0.000000e+00> : vector<1x96xf32>
    %45 = tpu.matmul %23, %32, %cst_23 {dimension_numbers = #tpu.dot_dimension_numbers<[1], [0], [0], [1], [0, 0, 1, 1], [], []>} : vector<1x8xf32>, vector<8x96xf32>, vector<1x96xf32> -> vector<1x96xf32>
    %46 = arith.addf %44, %45 : vector<1x96xf32>
    %47 = arith.addf %46, %33 : vector<1x96xf32>
    %cst_24 = arith.constant dense<0.000000e+00> : vector<1x96xf32>
    %48 = tpu.matmul %43, %34, %cst_24 {dimension_numbers = #tpu.dot_dimension_numbers<[1], [0], [0], [1], [0, 0, 1, 1], [], []>} : vector<1x32xf32>, vector<32x96xf32>, vector<1x96xf32> -> vector<1x96xf32>
    %49 = arith.addf %48, %35 : vector<1x96xf32>
    %50 = vector.extract_strided_slice %47 {offsets = [0, 0], sizes = [1, 64], strides = [1, 1]} : vector<1x96xf32> to vector<1x64xf32>
    %51 = vector.extract_strided_slice %49 {offsets = [0, 0], sizes = [1, 64], strides = [1, 1]} : vector<1x96xf32> to vector<1x64xf32>
    %52 = arith.addf %50, %51 : vector<1x64xf32>
    %53 = arith.negf %52 : vector<1x64xf32>
    %54 = math.exp %53 : vector<1x64xf32>
    %cst_25 = arith.constant 1.000000e+00 : f32
    %55 = vector.broadcast %cst_25 : f32 to vector<1x64xf32>
    %56 = arith.addf %55, %54 : vector<1x64xf32>
    %57 = arith.divf %55, %56 : vector<1x64xf32>
    %58 = vector.extract_strided_slice %57 {offsets = [0, 0], sizes = [1, 32], strides = [1, 1]} : vector<1x64xf32> to vector<1x32xf32>
    %59 = vector.extract_strided_slice %57 {offsets = [0, 32], sizes = [1, 32], strides = [1, 1]} : vector<1x64xf32> to vector<1x32xf32>
    %60 = vector.extract_strided_slice %47 {offsets = [0, 64], sizes = [1, 32], strides = [1, 1]} : vector<1x96xf32> to vector<1x32xf32>
    %61 = vector.extract_strided_slice %49 {offsets = [0, 64], sizes = [1, 32], strides = [1, 1]} : vector<1x96xf32> to vector<1x32xf32>
    %62 = arith.mulf %58, %61 : vector<1x32xf32>
    %63 = arith.addf %60, %62 : vector<1x32xf32>
    %64 = math.tanh %63 : vector<1x32xf32>
    %cst_26 = arith.constant 1.000000e+00 : f32
    %65 = vector.broadcast %cst_26 : f32 to vector<1x32xf32>
    %66 = arith.subf %65, %59 : vector<1x32xf32>
    %67 = arith.mulf %66, %64 : vector<1x32xf32>
    %68 = arith.mulf %59, %43 : vector<1x32xf32>
    %69 = arith.addf %67, %68 : vector<1x32xf32>
    %c0_27 = arith.constant 0 : index
    %c0_28 = arith.constant 0 : index
    %70 = vector.load %arg5[%c0_27, %c0_28] : memref<1x32xf32, #tpu.memory_space<vmem>>, vector<1x32xf32>
    tpu.vector_store %arg5[%c0_27, %c0_28], %69 {strides = array<i32>} : memref<1x32xf32, #tpu.memory_space<vmem>>, vector<1x32xf32>,
    %cst_29 = arith.constant dense<0.000000e+00> : vector<1xf32>
    %71 = vector.multi_reduction <add>, %69, %cst_29 [1] : vector<1x32xf32> to vector<1xf32>
    %72 = vector.shape_cast %71 : vector<1xf32> to vector<1x1xf32>
    %cst_30 = arith.constant 3.200000e+01 : f32
    %73 = vector.broadcast %cst_30 : f32 to vector<1x1xf32>
    %74 = arith.divf %72, %73 : vector<1x1xf32>
    %75 = vector.broadcast %74 : vector<1x1xf32> to vector<1x32xf32>
    %76 = arith.subf %69, %75 : vector<1x32xf32>
    %77 = arith.mulf %76, %76 : vector<1x32xf32>
    %cst_31 = arith.constant dense<0.000000e+00> : vector<1xf32>
    %78 = vector.multi_reduction <add>, %77, %cst_31 [1] : vector<1x32xf32> to vector<1xf32>
    %79 = vector.shape_cast %78 : vector<1xf32> to vector<1x1xf32>
    %cst_32 = arith.constant 3.200000e+01 : f32
    %80 = vector.broadcast %cst_32 : f32 to vector<1x1xf32>
    %81 = arith.divf %79, %80 : vector<1x1xf32>
    %82 = vector.broadcast %74 : vector<1x1xf32> to vector<1x32xf32>
    %83 = arith.subf %69, %82 : vector<1x32xf32>
    %cst_33 = arith.constant 9.99999997E-7 : f32
    %84 = vector.broadcast %cst_33 : f32 to vector<1x1xf32>
    %85 = arith.addf %81, %84 : vector<1x1xf32>
    %86 = math.rsqrt %85 : vector<1x1xf32>
    %87 = vector.broadcast %86 : vector<1x1xf32> to vector<1x32xf32>
    %88 = arith.mulf %83, %87 : vector<1x32xf32>
    %cst_34 = arith.constant dense<0.000000e+00> : vector<1x64xf32>
    %89 = tpu.matmul %88, %36, %cst_34 {dimension_numbers = #tpu.dot_dimension_numbers<[1], [0], [0], [1], [0, 0, 1, 1], [], []>} : vector<1x32xf32>, vector<32x64xf32>, vector<1x64xf32> -> vector<1x64xf32>
    %90 = arith.addf %89, %37 : vector<1x64xf32>
    %cst_35 = arith.constant dense<0xFF800000> : vector<1xf32>
    %91 = vector.multi_reduction <maximumf>, %90, %cst_35 [1] : vector<1x64xf32> to vector<1xf32>
    %92 = vector.shape_cast %91 : vector<1xf32> to vector<1x1xf32>
    %93 = vector.broadcast %92 : vector<1x1xf32> to vector<1x64xf32>
    %94 = arith.subf %90, %93 : vector<1x64xf32>
    %95 = math.exp %94 : vector<1x64xf32>
    %cst_36 = arith.constant dense<0.000000e+00> : vector<1xf32>
    %96 = vector.multi_reduction <add>, %95, %cst_36 [1] : vector<1x64xf32> to vector<1xf32>
    %97 = vector.shape_cast %96 : vector<1xf32> to vector<1x1xf32>
    %98 = math.log %97 : vector<1x1xf32>
    %99 = vector.broadcast %98 : vector<1x1xf32> to vector<1x64xf32>
    %100 = arith.subf %94, %99 : vector<1x64xf32>
    %c0_37 = arith.constant 0 : index
    %c0_38 = arith.constant 0 : index
    %101 = vector.load %arg4[%c0_37, %c0_38] : memref<1x128xf32, #tpu.memory_space<vmem>>, vector<1x64xf32>
    tpu.vector_store %arg4[%c0_37, %c0_38], %100 {strides = array<i32>} : memref<1x128xf32, #tpu.memory_space<vmem>>, vector<1x64xf32>,
    %c0_39 = arith.constant 0 : index
    %c64 = arith.constant 64 : index
    %102 = vector.load %arg4[%c0_39, %c64] : memref<1x128xf32, #tpu.memory_space<vmem>>, vector<1x32xf32>
    tpu.vector_store %arg4[%c0_39, %c64], %69 {strides = array<i32>} : memref<1x128xf32, #tpu.memory_space<vmem>>, vector<1x32xf32>,
    %cst_40 = arith.constant 0.000000e+00 : f32
    %103 = vector.broadcast %cst_40 : f32 to vector<1x32xf32>
    %c0_41 = arith.constant 0 : index
    %c96 = arith.constant 96 : index
    %104 = vector.load %arg4[%c0_41, %c96] : memref<1x128xf32, #tpu.memory_space<vmem>>, vector<1x32xf32>
    tpu.vector_store %arg4[%c0_41, %c96], %103 {strides = array<i32>} : memref<1x128xf32, #tpu.memory_space<vmem>>, vector<1x32xf32>,
    return
  }
  func.func @transform_0(%arg0: i32, %arg1: memref<3xi32, #tpu.memory_space<smem>>) -> (i32, i32) {
    %c0_i32 = arith.constant 0 : i32
    %c0_i32_0 = arith.constant 0 : i32
    %c0_i32_1 = arith.constant 0 : i32
    return %c0_i32, %c0_i32_0 : i32, i32
  }
  func.func @transform_1(%arg0: i32, %arg1: memref<3xi32, #tpu.memory_space<smem>>) -> (i32, i32) {
    %c0_i32 = arith.constant 0 : i32
    %c0_i32_0 = arith.constant 0 : i32
    %c0_i32_1 = arith.constant 0 : i32
    return %c0_i32, %c0_i32_0 : i32, i32
  }
  func.func @transform_2(%arg0: i32, %arg1: memref<3xi32, #tpu.memory_space<smem>>) -> (i32, i32) {
    %c0_i32 = arith.constant 0 : i32
    %c0_i32_0 = arith.constant 0 : i32
    return %arg0, %c0_i32 : i32, i32
  }
}

</mosaic_0001>

<bundles_post_ra>
// kernel: gen_loc_forward.1
= control target key start
LH: loop header
LB: loop body
LE: loop exit
PB: predicated region body
PF: predicated region fallthrough
CT: control target
= control target key end

     0   :  { %s865_s0 = inlined_call_operand.vmem [shape: s32[3], index: 0, kind: input, shape index: {}]   ;;  %s866_s1 = inlined_call_operand.vmem [shape: f32[1,32], index: 1, kind: input, shape index: {}]   ;;  %s867_s2 = inlined_call_operand.hbm [shape: f32[224,128], index: 2, kind: input, shape index: {}]   ;;  %s868_s3 = inlined_call_operand.vmem [shape: f32[1,128], index: 3, kind: output, shape index: {}]  }
   0x1   :  { %s8_s14 = sshll.u32 %s865_s0, 4  ;;  %s9_s14 = int_to_ptr.vmem [resolvable:$true] %s8_s14 }
   0x2   :  { %s730_s15 = scalar_lea.vmem %s9_s14, 16  ;;  %p735_p1 = scmp.lt.s32.totalorder %s9_s14, %s9_s14 }
   0x3   :  { %p731_p0 = scmp.ne.s32.totalorder %s9_s14, %s730_s15  ;;  %p736_p2 = scmp.lt.s32.totalorder %s730_s15, %s730_s15 }
   0x5   :  { %p737_p3 = por %p736_p2, %p735_p1 }
   0x7   :  { %p738_p4 = pnand %p737_p3, %p731_p0 }
   0x9   :  { %741 = shalt.err (!%p738_p4)  }
   0xa   :  { %s768_s16 = smov [#allocation4]  }
   0xb   :  { %11 = dma.vmem_to_smem %s9_s14, 16, %s768_s16, [#allocation3] }
   0xc   :  { %764 = dma.done.wait [#allocation3], 16 }
   0xd   :  { %765 = vsyncadd [#allocation3], 4294967280 }
   0xe   :  { %13 = sfence }
   0xf   :  { %14 = vsyncpa [#allocation6], 0  ;;  %s769_s17 = smov [#allocation5]   ;;  %s742_s0 = scalar_lea.hbm %s867_s2, 3584 }
  0x10   :  { %s22_s18 = sshll.u32 %s769_s17, 4  ;;  %p743_p5 = scmp.ne.s32.totalorder %s867_s2, %s742_s0  ;;  %s23_s18 = int_to_ptr.vmem [resolvable:$true] %s22_s18 }
  0x11   :  { %p746_p6 = scmp.lt.u32.totalorder %s742_s0, %s867_s2 }
  0x13   :  { %p748_p7 = pnand %p746_p6, %p743_p5 }
  0x15   :  { %751 = shalt.err (!%p748_p7)
}
  0x16   :  { %s752_s25 = scalar_lea.vmem %s23_s18, 3584  ;;  %p757_p9 = scmp.lt.s32.totalorder %s23_s18, %s23_s18 }
  0x17   :  { %p753_p8 = scmp.ne.s32.totalorder %s23_s18, %s752_s25  ;;  %p758_p10 = scmp.lt.s32.totalorder %s752_s25, %s752_s25 }
  0x19   :  { %p759_p11 = por %p758_p10, %p757_p9 }
  0x1b   :  { %p760_p12 = pnand %p759_p11, %p753_p8 }
  0x1d   :  { %763 = shalt.err (!%p760_p12)
}
  0x1e   :  { %s770_s26 = smov 128   ;;  %s771_s27 = smov 8  }
  0x1f   :  { %28 = dma.hbm_to_vmem [thread:$0]  %s867_s2, 3584, %s23_s18, [#allocation6], %s770_s26, %s770_s26, %s771_s27  }
  0x20   :  { %766 = dma.done.wait [#allocation6], 3584  }
  0x21   :  { %767 = vsyncadd [#allocation6], 4294963712  ;;  %v772_v0 = vmov 0.0|0.0   ;;  %v773_v1 = vmov 0.0   ;;  %s605_s30 = sld [smem:[#allocation4 + $0x2]]  ;;  %vm774_vm0 = vmmov 0  }
  0x22   :  { %687 = vmatprep.subr.bf16.mxu1 %v772_v0  ;;  %637 = vmatprep.subr.mxu0 %v773_v1  ;;  %v54_v2 = vld [vmem:[#allocation5 + $0x58] sm:$0xff]  ;;  %v55_v3 = vld [vmem:[#allocation5 + $0x60] sm:$0xff]  ;;  %v56_v4 = vld [vmem:[#allocation5 + $0x68] sm:$0xff]  ;;  %vm74_vm1 = vcmask 64512   ;;  %vm37_vm2 = vcmask 253952   ;;  %vm148_vm3 = vcmask 261120  }
  0x23   :  { %639 = vmatprep.mubr.msk.f32.mxu0 %vm774_vm0, %v773_v1  ;;  %650 = vmatprep.mubr.msk.f32.mxu1 %vm774_vm0, %v773_v1  ;;  %v688_v5 = vpack.c.bf16 %v55_v3, %v54_v2  ;;  %v57_v6 = vld [vmem:[#allocation5 + $0x70] sm:$0xff]  ;;  %v58_v7 = vld [vmem:[#allocation5 + $0x78] sm:$0xff]  ;;  %v65_v13 = vld [vmem:[#allocation5 + $0xa0] sm:$0xff]  ;;  %s41_s6 = sld [smem:[#allocation4]]  ;;  %vm297_vm4 = vcmask 130048   ;;  %s775_s9 = smov 64  }
  0x24   :  { %638 = vmatpush3.msra.mxu0 %v58_v7  ;;  %v36_v9 = vld [vmem:[%s866_s1] sm:$0x1]  ;;  %v691_v10 = vpack.c.bf16 %v57_v6, %v56_v4  ;;  %s604_s1 = sld [smem:[#allocation4 + $0x1]]  ;;  %v62_v15 = vld [vmem:[#allocation5 + $0x90] sm:$0xff]  ;;  %v60_v16 = vld [vmem:[#allocation5 + $0x80] sm:$0xff]  ;;  %s776_s10 = smov 96  }
  0x25   :  { %689 = vmatpush3.bf16.msra.mxu1 %v688_v5  ;;  %38 = vst.msk [vmem:[#allocation2] sm:$0x1] %vm37_vm2, %v36_v9  ;;  %653 = vmatprep.subr.mxu0 %v773_v1  ;;  %v64_v12 = vld [vmem:[#allocation5 + $0x98] sm:$0xff]  ;;  %v61_v17 = vld [vmem:[#allocation5 + $0x88] sm:$0xff]  ;;  %v67_v21 = vld [vmem:[#allocation5 + $0xb0] sm:$0xff]  ;;  %s777_s11 = smov 32  }
  0x26   :  { %690 = vmatprep.subr.bf16.mxu1 %v772_v0  ;;  %v697_v14 = vpack.c.bf16 %v65_v13, %v64_v12  ;;  %v694_v19 = vpack.c.bf16 %v61_v17, %v60_v16  ;;  %v66_v20 = vld [vmem:[#allocation5 + $0xa8] sm:$0xff]  ;;  %v59_v26 = vld [vmem:[#allocation5 + $0xd8] sm:$0x1]  ;;  %v68_v37 = vld [vmem:[#allocation5 + $0xda] sm:$0x1]  ;;  %vm573_vm5 = vcmask 516096  }
  0x27   :  { %s602_s2 = scalar_lea.vmem [#allocation5], %s605_s30  ;;  %v700_v22 = vpack.c.bf16 %v67_v21, %v66_v20  ;;  %v63_v41 = vld [vmem:[#allocation5 + $0xd9] sm:$0x1]  ;;  %v70_v6 = vld [vmem:[#allocation5 + $0xc0] sm:$0xff]  ;;  %v71_v7 = vld [vmem:[#allocation5 + $0xc8] sm:$0xff]  ;;  %vm590_vm6 = vcmask 778752  }
  0x28   :  { %v607_v8 = vld [vmem:[%s602_s2 + $0x40] sm:$0x1]  ;;  %v72_v9 = vld [vmem:[#allocation5 + $0xd0] sm:$0xff]  ;;  %v73_v17 = vld [vmem:[#allocation5 + $0xdb] sm:$0x1]  ;;  %vm592_vm7 = vcmask 1041152  }
  0x29   :  { %640 = vmatmul.mubr.msk.f32.vlgmr.msra.gmra.mrb[0].mxu0 %vm74_vm1, %v607_v8  ;;  %692 = vmatpush3.bf16.msra.mxu1 %v691_v10  ;;  %s46_s8 = scalar_lea.vmem [#allocation5], %s41_s6  ;;  %v69_v5 = vld [vmem:[#allocation5 + $0xb8] sm:$0xff]  ;;  %v706_v10 = vpack.c.bf16 %v72_v9, %v71_v7 }
  0x2a   :  { %655 = vmatprep.mubr.msk.f32.mxu0 %vm774_vm0, %v773_v1  ;;  %696 = vmatprep.subr.bf16.mxu1 %v772_v0  ;;  %s600_s7 = scalar_lea.vmem [#allocation5], %s604_s1  ;;  %v47_v23 = vld [vmem:[%s46_s8] sm:$0x1]  ;;  %v703_v8 = vpack.c.bf16 %v70_v6, %v69_v5 }
  0x2b   :  { %654 = vmatpush3.msra.mxu0 %v62_v15  ;;  %v606_v18 = vld [vmem:[%s600_s7 + $0x40] sm:$0x1] }
  0x2c   :  { %v39_v11 = vld [vmem:[#allocation2] sm:$0x1]  ;;  %693 = vmatprep.subr.bf16.mxu0 %v772_v0 }
  0x2d   :  { %651 = vmatmul.mubr.msk.f32.vlgmr.msra.gmra.mrb[0].mxu1 %vm148_vm3, %v39_v11  ;;  %656 = vmatmul.mubr.msk.f32.vlgmr.msra.gmra.mrb[2].mxu0 %vm74_vm1, %v606_v18 }
  0x2e   :  { %673 = vmatprep.mubr.msk.f32.mxu1 %vm774_vm0, %v773_v1  ;;  %698 = vmatpush3.bf16.msra.mxu1 %v697_v14 }
  0x2f   :  { %695 = vmatpush3.bf16.msra.mxu0 %v694_v19  ;;  %699 = vmatprep.subr.bf16.mxu1 %v772_v0 }
  0x30   :  { %662 = vmatprep.mubr.msk.f32.mxu0 %vm774_vm0, %v773_v1  ;;  %702 = vmatprep.subr.bf16.mxu0 %v772_v0 }
  0x32   :  { %701 = vmatpush3.bf16.msra.mxu1 %v700_v22  ;;  %663 = vmatmul.mubr.msk.f32.vlgmr.msra.gmra.mrb[4].mxu0 %vm297_vm4, %v47_v23 }
  0x33   :  { %684 = vmatprep.mubr.msk.f32.mxu0 %vm774_vm0, %v773_v1  ;;  %704 = vmatpush3.bf16.msra.mxu0 %v703_v8 }
  0x34   :  { %705 = vmatprep.subr.bf16.mxu0 %v772_v0 }
  0x37   :  { %707 = vmatpush3.bf16.msra.mxu0 %v706_v10 }
  0xfc   :  { %v144_v24 = vpop.f32.mrb[0].mxu0 }
  0xfd   :  { %v641_v25 = vpop.f32.mrb[1].mxu0 }
 0x100   :  { %v218_v27 = vpop.f32.mrb[0].mxu1  ;;  %v293_v32 = vpop.f32.mrb[2].mxu0 }
 0x101   :  { %v219_v28 = vadd.f32 %v218_v27, %v144_v24  ;;  %v652_v29 = vpop.f32.mrb[1].mxu1  ;;  %v657_v33 = vpop.f32.mrb[3].mxu0 }
 0x103   :  { %v222_v30 = vadd.f32 %v219_v28, %v59_v26 }
 0x105   :  { %v223_v31 = vmax.f32 %v222_v30, 0.0  ;;  %v367_v34 = vpop.f32.mrb[4].mxu0 }
 0x106   :  { %v368_v35 = vadd.f32 %v367_v34, %v293_v32  ;;  %v664_v36 = vpop.f32.mrb[5].mxu0 }
 0x107   :  { %674 = vmatmul.mubr.msk.f32.vlgmr.msra.gmra.mrb[2].mxu1 %vm148_vm3, %v223_v31 }
 0x108   :  { %v371_v42 = vadd.f32 %v368_v35, %v63_v41 }
 0x1da   :  { %v441_v38 = vpop.f32.mrb[2].mxu1 }
 0x1db   :  { %v442_v39 = vadd.f32 %v441_v38, %v68_v37  ;;  %v675_v40 = vpop.f32.mrb[3].mxu1 }
 0x1dd   :  { %453 = vrot.lane.b32.xlu0 %v442_v39, %s775_s9  ;;  %v445_v43 = vadd.f32 %v442_v39, %v371_v42 }
 0x1df   :  { %v613_v44 = vmul.f32 -1.442695, %v445_v43 }
 0x1e1   :  { %718 = vpow2.f32 %v613_v44 }
 0x1eb   :  { %v719_v45 = vpop.eup %718 }
 0x1ec   :  { %v449_v46 = vadd.f32 1.0, %v719_v45 }
 0x1ee   :  { %720 = vrcp.f32 %v449_v46 }
 0x1f8   :  { %v721_v47 = vpop.eup %720 }
 0x1f9   :  { %v463_v54 = vsub.f32 1.0, %v721_v47 }
 0x24f   :  { %v454_v48 = vpop.permute.xlu0 %453 }
 0x250   :  { %v456_v49 = vmul.f32 %v721_v47, %v454_v48 }
 0x252   :  { %458 = vrot.lane.b32.xlu0 %v456_v49, %s775_s9 }
 0x2c4   :  { %v459_v50 = vpop.permute.xlu0 %458 }
 0x2c5   :  { %v461_v51 = vadd.f32 %v459_v50, %v371_v42 }
 0x2c7   :  { %722 = vtanh.f32 %v461_v51 }
 0x2d1   :  { %v723_v52 = vpop.eup %722 }
 0x2d2   :  { %465 = vrot.lane.b32.xlu1 %v723_v52, %s776_s10 }
 0x2d6   :  { %469 = vrot.lane.b32.xlu1 %v223_v31, %s777_s11 }
 0x344   :  { %v466_v53 = vpop.permute.xlu1 %465 }
 0x345   :  { %v468_v56 = vmul.f32 %v466_v53, %v463_v54 }
 0x348   :  { %v470_v55 = vpop.permute.xlu1 %469 }
 0x349   :  { %v472_v57 = vmul.f32 %v721_v47, %v470_v55 }
 0x34b   :  { %v473_v58 = vadd.f32 %v472_v57, %v468_v56 }
 0x34d   :  { %475 = vrot.lane.b32.xlu0 %v473_v58, %s776_s10 }
 0x3bf   :  { %v476_v59 = vpop.permute.xlu0 %475 }
 0x3c0   :  { %479 = vst.msk [vmem:[#allocation2] sm:$0x1] %vm37_vm2, %v476_v59  ;;  %v480_v60 = vsel %vm37_vm2, %v476_v59, 0.0 }
 0x3c1   :  { %481 = vadd.xlane.f32.xlu1 %v480_v60 }
 0x44e   :  { %v482_v61 = vpop.xlane.xlu1 %481 }
 0x44f   :  { %v484_v62 = vmul.f32 0.03125, %v482_v61 }
 0x451   :  { %v485_v63 = vsub.f32 %v473_v58, %v484_v62 }
 0x453   :  { %v486_v2 = vmul.f32 %v485_v63, %v485_v63 }
 0x455   :  { %488 = vrot.lane.b32.xlu0 %v486_v2, %s776_s10 }
 0x4c7   :  { %v489_v3 = vpop.permute.xlu0 %488 }
 0x4c8   :  { %v491_v4 = vsel %vm37_vm2, %v489_v3, 0.0 }
 0x4c9   :  { %492 = vadd.xlane.f32.xlu0 %v491_v4 }
 0x556   :  { %v493_v11 = vpop.xlane.xlu0 %492 }
 0x557   :  { %v494_v12 = vmul.f32 0.03125, %v493_v11 }
 0x559   :  { %v495_v13 = vadd.f32 1e-06, %v494_v12 }
 0x55b   :  { %724 = vrsqrt.f32 %v495_v13 }
 0x565   :  { %v725_v14 = vpop.eup %724 }
 0x566   :  { %v497_v15 = vmul.f32 %v725_v14, %v485_v63 }
 0x568   :  { %499 = vrot.lane.b32.xlu1 %v497_v15, %s776_s10 }
 0x5da   :  { %v500_v16 = vpop.permute.xlu1 %499 }
 0x5db   :  { %685 = vmatmul.mubr.msk.f32.vlgmr.msra.gmra.mrb[6].mxu0 %vm148_vm3, %v500_v16 }
 0x6ae   :  { %v569_v18 = vpop.f32.mrb[6].mxu0 }
 0x6af   :  { %v570_v19 = vadd.f32 %v569_v18, %v73_v17  ;;  %v686_v20 = vpop.f32.mrb[7].mxu0 }
 0x6b1   :  { %v574_v21 = vsel %vm573_vm5, %v570_v19, -inf }
 0x6b2   :  { %575 = vmax.xlane.f32.xlu0 %v574_v21 }
 0x73f   :  { %v576_v0 = vpop.xlane.xlu0 %575 }
 0x740   :  { %v577_v22 = vsub.f32 %v570_v19, %v576_v0 }
 0x742   :  { %v578_v23 = vmul.f32 1.442695, %v577_v22 }
 0x744   :  { %726 = vpow2.f32 %v578_v23 }
 0x74e   :  { %v727_v24 = vpop.eup %726 }
 0x74f   :  { %v580_v25 = vsel %vm573_vm5, %v727_v24, 0.0 }
 0x750   :  { %581 = vadd.xlane.f32.xlu0 %v580_v25 }
 0x766   :  { %587 = vrot.lane.b32.xlu0 %v473_v58, %s777_s11 }
 0x7dd   :  { %v582_v26 = vpop.xlane.xlu0 %581 }
 0x7de   :  { %728 = vlog2.f32 %v582_v26 }
 0x7e1   :  { %v588_v30 = vpop.permute.xlu0 %587 }
 0x7e8   :  { %v729_v27 = vpop.eup %728 }
 0x7e9   :  { %v584_v28 = vmul.f32 0.6931472, %v729_v27 }
 0x7eb   :  { %v585_v29 = vsub.f32 %v577_v22, %v584_v28 }
 0x7ed   :  { %586 = vst.msk [vmem:[%s868_s3] sm:$0x1] %vm573_vm5, %v585_v29 }
 0x7ee   :  { %591 = vst.msk [vmem:[%s868_s3] sm:$0x1] %vm590_vm6, %v588_v30 }
 0x7ef   :  { %593 = vst.msk [vmem:[%s868_s3] sm:$0x1] %vm592_vm7, %v773_v1 }
 0x7f0   :  { %598 = vsyncpa [#allocation6], 1 }

</bundles_post_ra>
